<compile_context>
chip_gen: v6e
topology: v6e:2x2x1
jax: 0.10.0
libtpu: 0.0.40
codegen_flags: <defaults>
</compile_context>

<pallas_src>
import functools
import math

import jax
import jax.numpy as jnp
from jax.experimental import pallas as pl
from jax.experimental.pallas import tpu as pltpu


# ---------------------------------------------------------------------------
# Fused kernel: per-(batch, q_tile, head_block) projection + attention + unify
# ---------------------------------------------------------------------------
def _mha_kernel(xq_ref, xkv_ref, wq_ref, wkv_ref, wu_ref, bu_ref, o_ref,
                kv_cache, acc_ref, *, h_block, s, compute_dtype):
    qi = pl.program_id(1)
    hb = pl.program_id(2)

    # Unify bias folded into the accumulator init -> final store is a pure cast.
    @pl.when(hb == 0)
    def _():
        acc_ref[...] = jnp.broadcast_to(
            bu_ref[...].astype(jnp.float32), acc_ref.shape)

    # K/V projection depends only on (batch, head-block): compute it at the first
    # q-tile of each batch and cache it in VMEM for the remaining q-tiles.
    @pl.when(qi == 0)
    def _():
        kv_cache[hb] = jnp.dot(
            xkv_ref[0], wkv_ref[0],
            preferred_element_type=jnp.float32).astype(kv_cache.dtype)

    # Q projection for this q-tile / head-block (1/sqrt(k) pre-folded into Wq).
    q = jnp.dot(xq_ref[0], wq_ref[0],
                preferred_element_type=jnp.float32).astype(compute_dtype)
    kv = kv_cache[hb]                                    # (t_kv, 2*h_block*s)

    exact = jnp.dtype(compute_dtype) == jnp.dtype(jnp.float32)
    head_outs = []
    for hh in range(h_block):                            # static, unrolled
        q_h = q[:, hh * s:(hh + 1) * s]                  # (block_q, s)
        k_h = kv[:, hh * s:(hh + 1) * s]                 # (t_kv, s)
        v_h = kv[:, (h_block + hh) * s:(h_block + hh + 1) * s]

        # Scores: contract last dims (NT matmul, no in-kernel transpose), fp32.
        scores = jax.lax.dot_general(
            q_h, k_h, (((1,), (1,)), ((), ())),
            preferred_element_type=jnp.float32)          # (block_q, t_kv)

        # Numerically-stable softmax in fp32.
        scores = scores - jnp.max(scores, axis=-1, keepdims=True)
        p = jnp.exp(scores)
        denom = jnp.sum(p, axis=-1, keepdims=True)
        p = p * pl.reciprocal(denom, approx=not exact)

        head_outs.append(jnp.dot(p.astype(compute_dtype), v_h,
                                 preferred_element_type=jnp.float32))

    head_out = jnp.concatenate(head_outs, axis=-1)       # (block_q, h_block*s)

    # unify_heads: reduction over head-blocks, contraction width h_block*s.
    acc_ref[...] += jnp.dot(head_out.astype(compute_dtype), wu_ref[0],
                            preferred_element_type=jnp.float32)

    @pl.when(hb == pl.num_programs(2) - 1)
    def _():
        # Lane-dense, k-wide single store per (batch, q_tile).
        o_ref[0] = acc_ref[...].astype(o_ref.dtype)


def _pick_h_block(heads, k, s, t_kv, itemsize, budget=24 * 1024 * 1024):
    """Largest divisor of `heads` whose double-buffered weight blocks fit a
    conservative VMEM budget alongside the (all-heads) KV-projection cache."""
    kv_cache_bytes = t_kv * 2 * k * itemsize             # independent of h_block
    for hb in range(heads, 0, -1):
        if heads % hb:
            continue
        weight_bytes = 2 * 4 * k * hb * s * itemsize     # wq + wkv + wu, double-buffered
        if kv_cache_bytes + weight_bytes <= budget:
            return hb
    return 1


# ---------------------------------------------------------------------------
# Wrapper
# ---------------------------------------------------------------------------
def multi_head_attention(x, params, heads, *, y=None, block_q=None, h_block=None,
                         compute_dtype=jnp.bfloat16):
    """Fused multi-head self/cross attention.

    x: (b, t, k) queries input; y: optional (b, t, k) keys/values input.
    params follow the PyTorch nn.Linear convention (out = in @ W.T + b).
    """
    b, t, k = x.shape
    assert k % heads == 0
    s = k // heads

    kv_in = x if y is None else y
    assert kv_in.shape[0] == b and kv_in.shape[-1] == k, (
        "keys/values input must share batch and feature dims with x")
    t_kv = kv_in.shape[1]

    # Query-axis tiling bounds the fp32 (block_q, t_kv) score tile in VMEM.
    if block_q is None:
        block_q = t if t <= 256 else 256
    assert t % block_q == 0, "sequence length must be divisible by block_q"
    nq = t // block_q

    c_item = jnp.dtype(compute_dtype).itemsize
    if h_block is None:
        h_block = _pick_h_block(heads, k, s, t_kv, c_item)
    assert heads % h_block == 0
    n_hb = heads // h_block

    scale = 1.0 / math.sqrt(float(k))                    # module scales by sqrt(k), not sqrt(s)

    # ---- Trace-time weight prep (free): pre-transposed, head-blocked, scale folded.
    def _block_heads(w):                                 # (k,k) torch W -> (n_hb, k, h_block*s)
        return (w.T.reshape(k, n_hb, h_block, s)
                 .transpose(1, 0, 2, 3)
                 .reshape(n_hb, k, h_block * s))

    wq_b = (_block_heads(params["wq"]) * scale).astype(compute_dtype)
    wkv_b = jnp.concatenate(
        [_block_heads(params["wk"]), _block_heads(params["wv"])],
        axis=-1).astype(compute_dtype)                   # (n_hb, k, 2*h_block*s)
    wu_b = params["wu"].T.reshape(n_hb, h_block * s, k).astype(compute_dtype)
    bu2d = params["bu"].reshape(1, k).astype(jnp.float32)

    # Move activations in the MXU compute dtype (halves DMA/VMEM vs fp32 inputs).
    xq_c = x.astype(compute_dtype)
    xkv_c = kv_in.astype(compute_dtype)

    # ---- Explicit VMEM budget from actual block sizes (with headroom).
    est = 0
    est += 2 * block_q * k * c_item                      # Q block (double-buffered)
    est += 2 * t_kv * k * c_item                         # KV block
    est += 2 * 4 * k * h_block * s * c_item              # wq + wkv + wu blocks
    est += 2 * k * 4                                     # bias
    est += 2 * block_q * k * jnp.dtype(x.dtype).itemsize # output block
    est += n_hb * t_kv * 2 * h_block * s * c_item        # KV projection cache (scratch)
    est += block_q * k * 4                               # fp32 accumulator (scratch)
    est += 2 * block_q * t_kv * 4                        # live fp32 score/prob tiles
    vmem_limit = int(min(max(int(est * 1.5), 32 * 1024 * 1024), 96 * 1024 * 1024))

    kernel = functools.partial(_mha_kernel, h_block=h_block, s=s,
                               compute_dtype=compute_dtype)

    return pl.pallas_call(
        kernel,
        out_shape=jax.ShapeDtypeStruct((b, t, k), x.dtype),
        grid_spec=pltpu.PrefetchScalarGridSpec(
            num_scalar_prefetch=0,
            grid=(b, nq, n_hb),
            in_specs=[
                pl.BlockSpec((1, block_q, k), lambda bi, qi, hb: (bi, qi, 0)),     # x (queries)
                pl.BlockSpec((1, t_kv, k), lambda bi, qi, hb: (bi, 0, 0)),          # x/y (keys+vals)
                pl.BlockSpec((1, k, h_block * s), lambda bi, qi, hb: (hb, 0, 0)),   # Wq.T * scale
                pl.BlockSpec((1, k, 2 * h_block * s), lambda bi, qi, hb: (hb, 0, 0)),  # [Wk|Wv].T
                pl.BlockSpec((1, h_block * s, k), lambda bi, qi, hb: (hb, 0, 0)),   # Wu.T
                pl.BlockSpec((1, k), lambda bi, qi, hb: (0, 0)),                    # bias
            ],
            out_specs=pl.BlockSpec((1, block_q, k), lambda bi, qi, hb: (bi, qi, 0)),
            scratch_shapes=[
                pltpu.VMEM((n_hb, t_kv, 2 * h_block * s), compute_dtype),  # cached K/V projection
                pltpu.VMEM((block_q, k), jnp.float32),                     # output accumulator
            ],
        ),
        compiler_params=pltpu.CompilerParams(
            # The q-tile axis MUST be "arbitrary": the K/V cache written at qi == 0 is
            # consumed by qi > 0 on the same core.  Batch stays "parallel" for megacore.
            dimension_semantics=("parallel", "arbitrary", "arbitrary"),
            vmem_limit_bytes=vmem_limit),
    )(xq_c, xkv_c, wq_b, wkv_b, wu_b, bu2d)


# ---------------------------------------------------------------------------
# Pure-JAX reference (mirrors the PyTorch forward exactly)
# ---------------------------------------------------------------------------
def reference(x, params, heads, y=None):
    b, t, k = x.shape
    s = k // heads
    kv_in = x if y is None else y
    t_kv = kv_in.shape[1]
    q = x @ params["wq"].T
    kk = kv_in @ params["wk"].T
    v = kv_in @ params["wv"].T
    q = q.reshape(b, t, heads, s).transpose(0, 2, 1, 3)
    kk = kk.reshape(b, t_kv, heads, s).transpose(0, 2, 1, 3)
    v = v.reshape(b, t_kv, heads, s).transpose(0, 2, 1, 3)
    w = jnp.einsum("bhts,bhus->bhtu", q, kk) / math.sqrt(float(k))
    w = jax.nn.softmax(w, axis=-1)
    out = jnp.einsum("bhtu,bhus->bhts", w, v)
    out = out.transpose(0, 2, 1, 3).reshape(b, t, k)
    return out @ params["wu"].T + params["bu"]


if __name__ == "__main__":
    B, T, K, HEADS = 2, 16, 32, 4

    key = jax.random.PRNGKey(0)
    kx, ky, kq, kk_, kv_, ku, kb = jax.random.split(key, 7)

    x = jax.random.normal(kx, (B, T, K), dtype=jnp.float32)
    y = jax.random.normal(ky, (B, T, K), dtype=jnp.float32)

    # Deterministic synthetic parameters (PyTorch nn.Linear convention: out = in @ W.T + b)
    bound = 1.0 / math.sqrt(K)
    params = {
        "wq": jax.random.uniform(kq, (K, K), jnp.float32, -bound, bound),
        "wk": jax.random.uniform(kk_, (K, K), jnp.float32, -bound, bound),
        "wv": jax.random.uniform(kv_, (K, K), jnp.float32, -bound, bound),
        "wu": jax.random.uniform(ku, (K, K), jnp.float32, -bound, bound),
        "bu": jax.random.uniform(kb, (K,), jnp.float32, -bound, bound),
    }

    ref = reference(x, params, HEADS)

    # Default fast path: bf16 MXU operands / DMA, fp32 accumulation, all heads per step.
    out = jax.block_until_ready(multi_head_attention(x, params, HEADS))
    assert out.shape == (B, T, K)
    assert jnp.allclose(out, ref, atol=5e-2, rtol=5e-2), (
        f"bf16 max err {jnp.max(jnp.abs(out - ref))}")

    # Full-precision path with a tiled q-axis (exercises the cached-KV reuse at qi > 0)
    # and split head-blocks (exercises the head-block reduction). Tight check.
    out32 = jax.block_until_ready(
        multi_head_attention(x, params, HEADS, block_q=8, h_block=2,
                             compute_dtype=jnp.float32))
    assert jnp.allclose(out32, ref, atol=1e-3, rtol=1e-3), (
        f"fp32 max err {jnp.max(jnp.abs(out32 - ref))}")

    # Cross-attention path (y provided; the PyTorch module requires y.shape == x.shape).
    ref_y = reference(x, params, HEADS, y=y)
    out_y = jax.block_until_ready(
        multi_head_attention(x, params, HEADS, y=y, compute_dtype=jnp.float32))
    assert jnp.allclose(out_y, ref_y, atol=1e-3, rtol=1e-3), (
        f"cross-attn fp32 max err {jnp.max(jnp.abs(out_y - ref_y))}")

    print("KERNEL_OK")
</pallas_src>

<mosaic_0001>
module attributes {stable_mosaic.version = 11 : i64} {
  func.func @_mha_kernel(%arg0: i32, %arg1: i32, %arg2: i32, %arg3: memref<1x16x32xbf16, #tpu.memory_space<vmem>>, %arg4: memref<1x16x32xbf16, #tpu.memory_space<vmem>>, %arg5: memref<1x32x32xbf16, #tpu.memory_space<vmem>>, %arg6: memref<1x32x64xbf16, #tpu.memory_space<vmem>>, %arg7: memref<1x32x32xbf16, #tpu.memory_space<vmem>>, %arg8: memref<1x32xf32, #tpu.memory_space<vmem>>, %arg9: memref<1x16x32xf32, #tpu.memory_space<vmem>>, %arg10: memref<1x16x64xbf16, #tpu.memory_space<vmem>>, %arg11: memref<16x32xf32, #tpu.memory_space<vmem>>) attributes {dimension_semantics = [#tpu.dimension_semantics<parallel>, #tpu.dimension_semantics<arbitrary>, #tpu.dimension_semantics<arbitrary>], iteration_bounds = array<i64: 2, 1, 1>, scalar_prefetch = 0 : i64, scratch_operands = 2 : i64, tpu.core_type = #tpu.core_type<tc>, window_params = [{transform_indices = @transform_0, window_bounds = array<i64: 1, 16, 32>}, {transform_indices = @transform_1, window_bounds = array<i64: 1, 16, 32>}, {transform_indices = @transform_2, window_bounds = array<i64: 1, 32, 32>}, {transform_indices = @transform_3, window_bounds = array<i64: 1, 32, 64>}, {transform_indices = @transform_4, window_bounds = array<i64: 1, 32, 32>}, {pipeline_mode = #tpu.pipeline_mode<synchronous>, transform_indices = @transform_5, window_bounds = array<i64: 1, 32>}, {transform_indices = @transform_6, window_bounds = array<i64: 1, 16, 32>}]} {
    %c0_i32 = arith.constant 0 : i32
    %0 = arith.cmpi eq, %arg2, %c0_i32 : i32
    %1 = arith.extui %0 : i1 to i32
    %c0_i32_0 = arith.constant 0 : i32
    %2 = arith.cmpi ne, %1, %c0_i32_0 : i32
    scf.if %2 {
      %c0_36 = arith.constant 0 : index
      %c0_37 = arith.constant 0 : index
      %90 = vector.load %arg8[%c0_36, %c0_37] : memref<1x32xf32, #tpu.memory_space<vmem>>, vector<1x32xf32>
      %91 = vector.shape_cast %90 : vector<1x32xf32> to vector<1x32xf32>
      %92 = vector.broadcast %91 : vector<1x32xf32> to vector<16x32xf32>
      %c0_38 = arith.constant 0 : index
      %c0_39 = arith.constant 0 : index
      %93 = vector.load %arg11[%c0_38, %c0_39] : memref<16x32xf32, #tpu.memory_space<vmem>>, vector<16x32xf32>
      tpu.vector_store %arg11[%c0_38, %c0_39], %92 {strides = array<i32>} : memref<16x32xf32, #tpu.memory_space<vmem>>, vector<16x32xf32>,
    } else {
    }
    %c0_i32_1 = arith.constant 0 : i32
    %3 = arith.cmpi eq, %arg1, %c0_i32_1 : i32
    %4 = arith.extui %3 : i1 to i32
    %c0_i32_2 = arith.constant 0 : i32
    %5 = arith.cmpi ne, %4, %c0_i32_2 : i32
    scf.if %5 {
      %c0_36 = arith.constant 0 : index
      %c0_37 = arith.constant 0 : index
      %c0_38 = arith.constant 0 : index
      %90 = vector.load %arg4[%c0_36, %c0_37, %c0_38] : memref<1x16x32xbf16, #tpu.memory_space<vmem>>, vector<1x16x32xbf16>
      %91 = vector.shape_cast %90 : vector<1x16x32xbf16> to vector<16x32xbf16>
      %c0_39 = arith.constant 0 : index
      %c0_40 = arith.constant 0 : index
      %c0_41 = arith.constant 0 : index
      %92 = vector.load %arg6[%c0_39, %c0_40, %c0_41] : memref<1x32x64xbf16, #tpu.memory_space<vmem>>, vector<1x32x64xbf16>
      %93 = vector.shape_cast %92 : vector<1x32x64xbf16> to vector<32x64xbf16>
      %cst_42 = arith.constant dense<0.000000e+00> : vector<16x64xf32>
      %94 = tpu.matmul %91, %93, %cst_42 {dimension_numbers = #tpu.dot_dimension_numbers<[1], [0], [0], [1], [0, 0, 1, 1], [], []>} : vector<16x32xbf16>, vector<32x64xbf16>, vector<16x64xf32> -> vector<16x64xf32>
      %95 = arith.truncf %94 : vector<16x64xf32> to vector<16x64xbf16>
      %96 = arith.index_cast %arg2 : i32 to index
      %c0_43 = arith.constant 0 : index
      %c0_44 = arith.constant 0 : index
      %97 = vector.load %arg10[%96, %c0_43, %c0_44] : memref<1x16x64xbf16, #tpu.memory_space<vmem>>, vector<1x16x64xbf16>
      %98 = vector.shape_cast %97 : vector<1x16x64xbf16> to vector<16x64xbf16>
      %99 = vector.shape_cast %95 : vector<16x64xbf16> to vector<1x16x64xbf16>
      tpu.vector_store %arg10[%96, %c0_43, %c0_44], %99 {strides = array<i32>} : memref<1x16x64xbf16, #tpu.memory_space<vmem>>, vector<1x16x64xbf16>,
    } else {
    }
    %c0 = arith.constant 0 : index
    %c0_3 = arith.constant 0 : index
    %c0_4 = arith.constant 0 : index
    %6 = vector.load %arg3[%c0, %c0_3, %c0_4] : memref<1x16x32xbf16, #tpu.memory_space<vmem>>, vector<1x16x32xbf16>
    %7 = vector.shape_cast %6 : vector<1x16x32xbf16> to vector<16x32xbf16>
    %c0_5 = arith.constant 0 : index
    %c0_6 = arith.constant 0 : index
    %c0_7 = arith.constant 0 : index
    %8 = vector.load %arg5[%c0_5, %c0_6, %c0_7] : memref<1x32x32xbf16, #tpu.memory_space<vmem>>, vector<1x32x32xbf16>
    %9 = vector.shape_cast %8 : vector<1x32x32xbf16> to vector<32x32xbf16>
    %cst = arith.constant dense<0.000000e+00> : vector<16x32xf32>
    %10 = tpu.matmul %7, %9, %cst {dimension_numbers = #tpu.dot_dimension_numbers<[1], [0], [0], [1], [0, 0, 1, 1], [], []>} : vector<16x32xbf16>, vector<32x32xbf16>, vector<16x32xf32> -> vector<16x32xf32>
    %11 = arith.truncf %10 : vector<16x32xf32> to vector<16x32xbf16>
    %12 = arith.index_cast %arg2 : i32 to index
    %c0_8 = arith.constant 0 : index
    %c0_9 = arith.constant 0 : index
    %13 = vector.load %arg10[%12, %c0_8, %c0_9] : memref<1x16x64xbf16, #tpu.memory_space<vmem>>, vector<1x16x64xbf16>
    %14 = vector.shape_cast %13 : vector<1x16x64xbf16> to vector<16x64xbf16>
    %15 = vector.extract_strided_slice %11 {offsets = [0, 0], sizes = [16, 8], strides = [1, 1]} : vector<16x32xbf16> to vector<16x8xbf16>
    %16 = vector.extract_strided_slice %14 {offsets = [0, 0], sizes = [16, 8], strides = [1, 1]} : vector<16x64xbf16> to vector<16x8xbf16>
    %17 = vector.extract_strided_slice %14 {offsets = [0, 32], sizes = [16, 8], strides = [1, 1]} : vector<16x64xbf16> to vector<16x8xbf16>
    %cst_10 = arith.constant dense<0.000000e+00> : vector<16x16xf32>
    %18 = tpu.matmul %15, %16, %cst_10 {dimension_numbers = #tpu.dot_dimension_numbers<[1], [1], [0], [0], [0, 0, 1, 0], [], []>} : vector<16x8xbf16>, vector<16x8xbf16>, vector<16x16xf32> -> vector<16x16xf32>
    %cst_11 = arith.constant dense<0xFF800000> : vector<16xf32>
    %19 = vector.multi_reduction <maximumf>, %18, %cst_11 [1] : vector<16x16xf32> to vector<16xf32>
    %20 = vector.shape_cast %19 : vector<16xf32> to vector<16x1xf32>
    %21 = vector.broadcast %20 : vector<16x1xf32> to vector<16x16xf32>
    %22 = arith.subf %18, %21 : vector<16x16xf32>
    %23 = math.exp %22 : vector<16x16xf32>
    %cst_12 = arith.constant dense<0.000000e+00> : vector<16xf32>
    %24 = vector.multi_reduction <add>, %23, %cst_12 [1] : vector<16x16xf32> to vector<16xf32>
    %25 = vector.shape_cast %24 : vector<16xf32> to vector<16x1xf32>
    %26 = tpu.reciprocal %25 {approx = true} : vector<16x1xf32> -> vector<16x1xf32>
    %27 = vector.broadcast %26 : vector<16x1xf32> to vector<16x16xf32>
    %28 = arith.mulf %23, %27 : vector<16x16xf32>
    %29 = arith.truncf %28 : vector<16x16xf32> to vector<16x16xbf16>
    %cst_13 = arith.constant dense<0.000000e+00> : vector<16x8xf32>
    %30 = tpu.matmul %29, %17, %cst_13 {dimension_numbers = #tpu.dot_dimension_numbers<[1], [0], [0], [1], [0, 0, 1, 1], [], []>} : vector<16x16xbf16>, vector<16x8xbf16>, vector<16x8xf32> -> vector<16x8xf32>
    %31 = vector.extract_strided_slice %11 {offsets = [0, 8], sizes = [16, 8], strides = [1, 1]} : vector<16x32xbf16> to vector<16x8xbf16>
    %32 = vector.extract_strided_slice %14 {offsets = [0, 8], sizes = [16, 8], strides = [1, 1]} : vector<16x64xbf16> to vector<16x8xbf16>
    %33 = vector.extract_strided_slice %14 {offsets = [0, 40], sizes = [16, 8], strides = [1, 1]} : vector<16x64xbf16> to vector<16x8xbf16>
    %cst_14 = arith.constant dense<0.000000e+00> : vector<16x16xf32>
    %34 = tpu.matmul %31, %32, %cst_14 {dimension_numbers = #tpu.dot_dimension_numbers<[1], [1], [0], [0], [0, 0, 1, 0], [], []>} : vector<16x8xbf16>, vector<16x8xbf16>, vector<16x16xf32> -> vector<16x16xf32>
    %cst_15 = arith.constant dense<0xFF800000> : vector<16xf32>
    %35 = vector.multi_reduction <maximumf>, %34, %cst_15 [1] : vector<16x16xf32> to vector<16xf32>
    %36 = vector.shape_cast %35 : vector<16xf32> to vector<16x1xf32>
    %37 = vector.broadcast %36 : vector<16x1xf32> to vector<16x16xf32>
    %38 = arith.subf %34, %37 : vector<16x16xf32>
    %39 = math.exp %38 : vector<16x16xf32>
    %cst_16 = arith.constant dense<0.000000e+00> : vector<16xf32>
    %40 = vector.multi_reduction <add>, %39, %cst_16 [1] : vector<16x16xf32> to vector<16xf32>
    %41 = vector.shape_cast %40 : vector<16xf32> to vector<16x1xf32>
    %42 = tpu.reciprocal %41 {approx = true} : vector<16x1xf32> -> vector<16x1xf32>
    %43 = vector.broadcast %42 : vector<16x1xf32> to vector<16x16xf32>
    %44 = arith.mulf %39, %43 : vector<16x16xf32>
    %45 = arith.truncf %44 : vector<16x16xf32> to vector<16x16xbf16>
    %cst_17 = arith.constant dense<0.000000e+00> : vector<16x8xf32>
    %46 = tpu.matmul %45, %33, %cst_17 {dimension_numbers = #tpu.dot_dimension_numbers<[1], [0], [0], [1], [0, 0, 1, 1], [], []>} : vector<16x16xbf16>, vector<16x8xbf16>, vector<16x8xf32> -> vector<16x8xf32>
    %47 = vector.extract_strided_slice %11 {offsets = [0, 16], sizes = [16, 8], strides = [1, 1]} : vector<16x32xbf16> to vector<16x8xbf16>
    %48 = vector.extract_strided_slice %14 {offsets = [0, 16], sizes = [16, 8], strides = [1, 1]} : vector<16x64xbf16> to vector<16x8xbf16>
    %49 = vector.extract_strided_slice %14 {offsets = [0, 48], sizes = [16, 8], strides = [1, 1]} : vector<16x64xbf16> to vector<16x8xbf16>
    %cst_18 = arith.constant dense<0.000000e+00> : vector<16x16xf32>
    %50 = tpu.matmul %47, %48, %cst_18 {dimension_numbers = #tpu.dot_dimension_numbers<[1], [1], [0], [0], [0, 0, 1, 0], [], []>} : vector<16x8xbf16>, vector<16x8xbf16>, vector<16x16xf32> -> vector<16x16xf32>
    %cst_19 = arith.constant dense<0xFF800000> : vector<16xf32>
    %51 = vector.multi_reduction <maximumf>, %50, %cst_19 [1] : vector<16x16xf32> to vector<16xf32>
    %52 = vector.shape_cast %51 : vector<16xf32> to vector<16x1xf32>
    %53 = vector.broadcast %52 : vector<16x1xf32> to vector<16x16xf32>
    %54 = arith.subf %50, %53 : vector<16x16xf32>
    %55 = math.exp %54 : vector<16x16xf32>
    %cst_20 = arith.constant dense<0.000000e+00> : vector<16xf32>
    %56 = vector.multi_reduction <add>, %55, %cst_20 [1] : vector<16x16xf32> to vector<16xf32>
    %57 = vector.shape_cast %56 : vector<16xf32> to vector<16x1xf32>
    %58 = tpu.reciprocal %57 {approx = true} : vector<16x1xf32> -> vector<16x1xf32>
    %59 = vector.broadcast %58 : vector<16x1xf32> to vector<16x16xf32>
    %60 = arith.mulf %55, %59 : vector<16x16xf32>
    %61 = arith.truncf %60 : vector<16x16xf32> to vector<16x16xbf16>
    %cst_21 = arith.constant dense<0.000000e+00> : vector<16x8xf32>
    %62 = tpu.matmul %61, %49, %cst_21 {dimension_numbers = #tpu.dot_dimension_numbers<[1], [0], [0], [1], [0, 0, 1, 1], [], []>} : vector<16x16xbf16>, vector<16x8xbf16>, vector<16x8xf32> -> vector<16x8xf32>
    %63 = vector.extract_strided_slice %11 {offsets = [0, 24], sizes = [16, 8], strides = [1, 1]} : vector<16x32xbf16> to vector<16x8xbf16>
    %64 = vector.extract_strided_slice %14 {offsets = [0, 24], sizes = [16, 8], strides = [1, 1]} : vector<16x64xbf16> to vector<16x8xbf16>
    %65 = vector.extract_strided_slice %14 {offsets = [0, 56], sizes = [16, 8], strides = [1, 1]} : vector<16x64xbf16> to vector<16x8xbf16>
    %cst_22 = arith.constant dense<0.000000e+00> : vector<16x16xf32>
    %66 = tpu.matmul %63, %64, %cst_22 {dimension_numbers = #tpu.dot_dimension_numbers<[1], [1], [0], [0], [0, 0, 1, 0], [], []>} : vector<16x8xbf16>, vector<16x8xbf16>, vector<16x16xf32> -> vector<16x16xf32>
    %cst_23 = arith.constant dense<0xFF800000> : vector<16xf32>
    %67 = vector.multi_reduction <maximumf>, %66, %cst_23 [1] : vector<16x16xf32> to vector<16xf32>
    %68 = vector.shape_cast %67 : vector<16xf32> to vector<16x1xf32>
    %69 = vector.broadcast %68 : vector<16x1xf32> to vector<16x16xf32>
    %70 = arith.subf %66, %69 : vector<16x16xf32>
    %71 = math.exp %70 : vector<16x16xf32>
    %cst_24 = arith.constant dense<0.000000e+00> : vector<16xf32>
    %72 = vector.multi_reduction <add>, %71, %cst_24 [1] : vector<16x16xf32> to vector<16xf32>
    %73 = vector.shape_cast %72 : vector<16xf32> to vector<16x1xf32>
    %74 = tpu.reciprocal %73 {approx = true} : vector<16x1xf32> -> vector<16x1xf32>
    %75 = vector.broadcast %74 : vector<16x1xf32> to vector<16x16xf32>
    %76 = arith.mulf %71, %75 : vector<16x16xf32>
    %77 = arith.truncf %76 : vector<16x16xf32> to vector<16x16xbf16>
    %cst_25 = arith.constant dense<0.000000e+00> : vector<16x8xf32>
    %78 = tpu.matmul %77, %65, %cst_25 {dimension_numbers = #tpu.dot_dimension_numbers<[1], [0], [0], [1], [0, 0, 1, 1], [], []>} : vector<16x16xbf16>, vector<16x8xbf16>, vector<16x8xf32> -> vector<16x8xf32>
    %79 = tpu.concatenate %30, %46, %62, %78 in 1 : vector<16x8xf32>, vector<16x8xf32>, vector<16x8xf32>, vector<16x8xf32> -> vector<16x32xf32>
    %c0_26 = arith.constant 0 : index
    %c0_27 = arith.constant 0 : index
    %80 = vector.load %arg11[%c0_26, %c0_27] : memref<16x32xf32, #tpu.memory_space<vmem>>, vector<16x32xf32>
    %81 = arith.truncf %79 : vector<16x32xf32> to vector<16x32xbf16>
    %c0_28 = arith.constant 0 : index
    %c0_29 = arith.constant 0 : index
    %c0_30 = arith.constant 0 : index
    %82 = vector.load %arg7[%c0_28, %c0_29, %c0_30] : memref<1x32x32xbf16, #tpu.memory_space<vmem>>, vector<1x32x32xbf16>
    %83 = vector.shape_cast %82 : vector<1x32x32xbf16> to vector<32x32xbf16>
    %cst_31 = arith.constant dense<0.000000e+00> : vector<16x32xf32>
    %84 = tpu.matmul %81, %83, %cst_31 {dimension_numbers = #tpu.dot_dimension_numbers<[1], [0], [0], [1], [0, 0, 1, 1], [], []>} : vector<16x32xbf16>, vector<32x32xbf16>, vector<16x32xf32> -> vector<16x32xf32>
    %85 = arith.addf %80, %84 : vector<16x32xf32>
    %c0_32 = arith.constant 0 : index
    %c0_33 = arith.constant 0 : index
    %86 = vector.load %arg11[%c0_32, %c0_33] : memref<16x32xf32, #tpu.memory_space<vmem>>, vector<16x32xf32>
    tpu.vector_store %arg11[%c0_32, %c0_33], %85 {strides = array<i32>} : memref<16x32xf32, #tpu.memory_space<vmem>>, vector<16x32xf32>,
    %c0_i32_34 = arith.constant 0 : i32
    %87 = arith.cmpi eq, %arg2, %c0_i32_34 : i32
    %88 = arith.extui %87 : i1 to i32
    %c0_i32_35 = arith.constant 0 : i32
    %89 = arith.cmpi ne, %88, %c0_i32_35 : i32
    scf.if %89 {
      %c0_36 = arith.constant 0 : index
      %c0_37 = arith.constant 0 : index
      %90 = vector.load %arg11[%c0_36, %c0_37] : memref<16x32xf32, #tpu.memory_space<vmem>>, vector<16x32xf32>
      %c0_38 = arith.constant 0 : index
      %c0_39 = arith.constant 0 : index
      %c0_40 = arith.constant 0 : index
      %91 = vector.load %arg9[%c0_38, %c0_39, %c0_40] : memref<1x16x32xf32, #tpu.memory_space<vmem>>, vector<1x16x32xf32>
      %92 = vector.shape_cast %91 : vector<1x16x32xf32> to vector<16x32xf32>
      %93 = vector.shape_cast %90 : vector<16x32xf32> to vector<1x16x32xf32>
      tpu.vector_store %arg9[%c0_38, %c0_39, %c0_40], %93 {strides = array<i32>} : memref<1x16x32xf32, #tpu.memory_space<vmem>>, vector<1x16x32xf32>,
    } else {
    }
    return
  }
  func.func @transform_0(%arg0: i32, %arg1: i32, %arg2: i32) -> (i32, i32, i32) {
    %c0_i32 = arith.constant 0 : i32
    %c0_i32_0 = arith.constant 0 : i32
    return %arg0, %arg1, %c0_i32 : i32, i32, i32
  }
  func.func @transform_1(%arg0: i32, %arg1: i32, %arg2: i32) -> (i32, i32, i32) {
    %c0_i32 = arith.constant 0 : i32
    %c0_i32_0 = arith.constant 0 : i32
    %c0_i32_1 = arith.constant 0 : i32
    return %arg0, %c0_i32, %c0_i32_0 : i32, i32, i32
  }
  func.func @transform_2(%arg0: i32, %arg1: i32, %arg2: i32) -> (i32, i32, i32) {
    %c0_i32 = arith.constant 0 : i32
    %c0_i32_0 = arith.constant 0 : i32
    %c0_i32_1 = arith.constant 0 : i32
    return %arg2, %c0_i32, %c0_i32_0 : i32, i32, i32
  }
  func.func @transform_3(%arg0: i32, %arg1: i32, %arg2: i32) -> (i32, i32, i32) {
    %c0_i32 = arith.constant 0 : i32
    %c0_i32_0 = arith.constant 0 : i32
    %c0_i32_1 = arith.constant 0 : i32
    return %arg2, %c0_i32, %c0_i32_0 : i32, i32, i32
  }
  func.func @transform_4(%arg0: i32, %arg1: i32, %arg2: i32) -> (i32, i32, i32) {
    %c0_i32 = arith.constant 0 : i32
    %c0_i32_0 = arith.constant 0 : i32
    %c0_i32_1 = arith.constant 0 : i32
    return %arg2, %c0_i32, %c0_i32_0 : i32, i32, i32
  }
  func.func @transform_5(%arg0: i32, %arg1: i32, %arg2: i32) -> (i32, i32) {
    %c0_i32 = arith.constant 0 : i32
    %c0_i32_0 = arith.constant 0 : i32
    %c0_i32_1 = arith.constant 0 : i32
    return %c0_i32, %c0_i32_0 : i32, i32
  }
  func.func @transform_6(%arg0: i32, %arg1: i32, %arg2: i32) -> (i32, i32, i32) {
    %c0_i32 = arith.constant 0 : i32
    %c0_i32_0 = arith.constant 0 : i32
    return %arg0, %arg1, %c0_i32 : i32, i32, i32
  }
}

</mosaic_0001>

<bundles_post_ra>
// kernel: tpu_custom_call.1
= control target key start
LH: loop header
LB: loop body
LE: loop exit
PB: predicated region body
PF: predicated region fallthrough
CT: control target
= control target key end

     0   :  { %s2270_s0 = inlined_call_operand.hbm [shape: bf16[2,16,32], index: 0, kind: input, shape index: {}]   ;;  %s2271_s1 = inlined_call_operand.hbm [shape: bf16[2,16,32], index: 1, kind: input, shape index: {}]   ;;  %s2272_s2 = inlined_call_operand.hbm [shape: bf16[1,32,32], index: 2, kind: input, shape index: {}]   ;;  %s2273_s3 = inlined_call_operand.hbm [shape: bf16[1,32,64], index: 3, kind: input, shape index: {}]   ;;  %s2274_s4 = inlined_call_operand.hbm [shape: bf16[1,32,32], index: 4, kind: input, shape index: {}]   ;;  %s2275_s5 = inlined_call_operand.vmem [shape: f32[1,32], index: 5, kind: input, shape index: {}]   ;;  %s2276_s6 = inlined_call_operand.hbm [shape: f32[2,16,32], index: 6, kind: output, shape index: {}]  }
   0x1   :  { %2283 = sst [smem:[#allocation20_spill]] %s2270_s0 }
   0x2   :  { %2284 = sst [smem:[#allocation21_spill]] %s2272_s2 }
   0x3   :  { %2285 = sst [smem:[#allocation22_spill]] %s2273_s3 }
   0x4   :  { %2286 = sst [smem:[#allocation23_spill]] %s2274_s4 }
   0x5   :  { %11 = vsyncpa [#allocation5], 0 }
   0x6   :  { %13 = vsyncpa [#allocation5 + $0x1], 0 }
   0x7   :  { %14 = vsyncpa [#allocation8], 0 }
   0x8   :  { %16 = vsyncpa [#allocation8 + $0x1], 0 }
   0x9   :  { %17 = vsyncpa [#allocation11], 0 }
   0xa   :  { %18 = vsyncpa [#allocation6], 0 }
   0xb   :  { %20 = vsyncpa [#allocation6 + $0x1], 0  ;;  %s1942_s21 = smov 0   ;;  %s1944_s22 = smov 0  }
   0xc   :  { %s1946_s23 = smov 0   ;;  %s1948_s24 = smov 0  }
   0xd   :  { %s1950_s25 = smov 0   ;;  %s1952_s26 = smov 0  }
   0xe LB: > { %s1973_s27 = sadd.s32 4294967295, %s1884_s26   ;;  %s1340_s28 = sadd.s32 4294967294, %s1884_s26   ;;  %s1884_s26 = sphi %s1952_s26, %s26_s26   ;;  %s1880_s25 = sphi %s1950_s25, %s2310_s25   ;;  %s1876_s24 = sphi %s1948_s24, %s2309_s24   ;;  %s1872_s23 = sphi %s1946_s23, %s2308_s23   ;;  %s1868_s22 = sphi %s1944_s22, %s2307_s22   ;;  %s1864_s21 = sphi %s1942_s21, %s2306_s21  }
   0xf   : > { %p67_p0 = scmp.ne.s32.totalorder %s1868_s22, %s1864_s21  ;;  %p2277_p1 = scmp.eq.s32.totalorder %s1973_s27, 0 }
  0x10   : > { %p218_p2 = scmp.eq.s32.totalorder %s1973_s27, 1  ;;  %p224_p3 = scmp.eq.s32.totalorder %s1340_s28, 1 }
  0x11   : > { %p1982_p4 = por %p2277_p1, %p67_p0  ;;  %p1341_p5 = scmp.ge.s32.totalorder %s1884_s26, 1 }
  0x12   : > { %p1987_p6 = por %p224_p3, %p67_p0  ;;  %p231_p7 = scmp.lt.s32.totalorder %s1884_s26, 3 }
  0x13   : > { %s1886_s8 = smov [#allocation9]   ;;  %s1887_s11 = smov [#allocation10]  }
  0x14   : > { %p1992_p8 = pnand %p1341_p5, %p231_p7  ;;  %s246_s9 = sshll.u32 %s1886_s8, 4  ;;  %s247_s9 = int_to_ptr.vmem [resolvable:$true] %s246_s9 }
  0x15   : > { %s262_s12 = sshll.u32 %s1887_s11, 4  ;;  %s1888_s13 = smov [#allocation12]   ;;  %s263_s12 = int_to_ptr.vmem [resolvable:$true] %s262_s12 }
  0x16   : > { %p1507_p9 = pneg %p1992_p8  ;;  %s278_s14 = sshll.u32 %s1888_s13, 4  ;;  %s279_s14 = int_to_ptr.vmem [resolvable:$true] %s278_s14 }
  0x17   : > { %s1669_s15 = scalar_lea.vmem %s247_s9, 256  ;;  %p1677_p5 = scmp.lt.s32.totalorder %s247_s9, %s247_s9 }
  0x18   : > { %p2001_p11 = pnand %p1507_p9, %p2277_p1  ;;  %p1670_p13 = scmp.ne.s32.totalorder %s247_s9, %s1669_s15 }
  0x19   : > { %p1678_p7 = scmp.lt.s32.totalorder %s1669_s15, %s1669_s15 }
  0x1a   : > { %p1660_p12 = pneg %p2001_p11 }
  0x1b   : > { %p1679_p9 = por %p1678_p7, %p1677_p5 }
  0x1c   : > { %p1672_p0 = pnand %p1670_p13, %p1660_p12 }
  0x1e   : > { %p1673_p3 = pneg %p1672_p0 }
  0x20   : > { %p1680_p10 = pnand %p1679_p9, %p1673_p3 }
  0x22   : > { %1683 = shalt.err (!%p1680_p10)
}
  0x23   : > { %s2278_s16 = smov 64   ;;  %s2280_s17 = smov 4  }
  0x24   : > { %s2291_s2 = sld [smem:[#allocation21_spill]]  ;;  %s1695_s20 = scalar_lea.vmem %s263_s12, 256 }
  0x25   : > { %p1696_p13 = scmp.ne.s32.totalorder %s263_s12, %s1695_s20  ;;  %p1703_p3 = scmp.lt.s32.totalorder %s263_s12, %s263_s12 }
  0x26   : > { %p1704_p10 = scmp.lt.s32.totalorder %s1695_s20, %s1695_s20 }
  0x27   : > { %p1698_p0 = pnand %p1696_p13, %p1660_p12 }
  0x28   : > { %p1705_p7 = por %p1704_p10, %p1703_p3 }
  0x29   : > { %p1699_p5 = pneg %p1698_p0 }
  0x2a   : > { %1510 = dma.hbm_to_vmem [thread:$0]  (!%p2001_p11), %s2291_s2, 256, %s247_s9, [#allocation8], %s2278_s16, %s2278_s16, %s2280_s17  }
  0x2b   : > { %p1706_p9 = pnand %p1705_p7, %p1699_p5 }
  0x2d   : > { %1709 = shalt.err (!%p1706_p9)
}
  0x2e   : > { %s2292_s3 = sld [smem:[#allocation22_spill]]  ;;  %s1721_s9 = scalar_lea.vmem %s279_s14, 256 }
  0x2f   : > { %p1722_p1 = scmp.ne.s32.totalorder %s279_s14, %s1721_s9  ;;  %p1729_p3 = scmp.lt.s32.totalorder %s279_s14, %s279_s14 }
  0x30   : > { %p1730_p5 = scmp.lt.s32.totalorder %s1721_s9, %s1721_s9 }
  0x31   : > { %p1724_p13 = pnand %p1722_p1, %p1660_p12 }
  0x32   : > { %p1731_p10 = por %p1730_p5, %p1729_p3 }
  0x33   : > { %p1725_p0 = pneg %p1724_p13 }
  0x34   : > { %1513 = dma.hbm_to_vmem [thread:$0]  (!%p2001_p11), %s2292_s3, 256, %s263_s12, [#allocation11], %s2278_s16, %s2278_s16, %s2280_s17  }
  0x35   : > { %p1732_p7 = pnand %p1731_p10, %p1725_p0 }
  0x37   : > { %1735 = shalt.err (!%p1732_p7)
}
  0x38   : > { %s2293_s4 = sld [smem:[#allocation23_spill]]  ;;  %s54_s12 = sadd.s32 1, %s1872_s23 }
  0x39   : > { %s45_s10 = sadd.s32 1, %s1880_s25  ;;  %p61_p1 = scmp.ne.s32.totalorder %s1872_s23, %s1868_s22 }
  0x3a   : > { %p47_p12 = scmp.ge.s32.totalorder %s45_s10, 2  ;;  %p62_p9 = scmp.eq.s32.totalorder %s1884_s26, 0 }
  0x3b   : > { %p2047_p13 = por %p218_p2, %p61_p1  ;;  %p1531_p0 = scmp.lt.s32.totalorder %s1884_s26, 2 }
  0x3c   : > { %s2312_s10 = smov (%p47_p12, %s45_s10), 0  ;;  %p63_p3 = por %p62_p9, %p61_p1 }
  0x3d   : > { %2295 = sst [smem:[#allocation19_spill]] %s2312_s10  ;;  %s295_s18 = sand.u32 1, %s1872_s23  }
  0x3e   : > { %1516 = dma.hbm_to_vmem [thread:$0]  (!%p2001_p11), %s2293_s4, 256, %s279_s14, [#allocation11], %s2278_s16, %s2278_s16, %s2280_s17  }
  0x3f   : > { %s49_s19 = ssub.s32 %s1880_s25, %s2312_s10  ;;  %s1346_s14 = sshll.u32 %s295_s18, 3 }
  0x40   : > { %p52_p5 = scmp.eq.s32.totalorder %s49_s19, 0  ;;  %s1387_s20 = sshll.u32 %s1880_s25, 7 }
  0x41   : > { %s2296_s0 = sld [smem:[#allocation20_spill]]  ;;  %s299_s13 = scalar_lea.vmem [#allocation4], %s1346_s14 }
  0x42   : > { %s2059_s28 = scalar_select %p52_p5, %s1872_s23, %s54_s12  }
  0x43   : > { %s308_s16 = sshll.u32 %s299_s13, 4  ;;  %p2066_p2 = pnand %p1531_p0, %p63_p3  ;;  %s309_s16 = int_to_ptr.vmem [resolvable:$true] %s308_s16 }
  0x44   : > { %s2073_s19 = scalar_lea.hbm %s2271_s1, %s1387_s20  ;;  %s322_s12 = scalar_lea.vmem [#allocation7], %s1346_s14 }
  0x45   : > { %s329_s4 = sshll.u32 %s322_s12, 4  ;;  %s296_s10 = scalar_lea.sflag [#allocation5], %s295_s18  ;;  %s330_s4 = int_to_ptr.vmem [resolvable:$true] %s329_s4 }
  0x46   : > { %p1738_p11 = pneg %p2066_p2  ;;  %s1749_s8 = scalar_lea.vmem %s309_s16, 128 }
  0x47   : > { %s307_s11 = scalar_lea.hbm %s2296_s0, %s1387_s20  ;;  %p1750_p10 = scmp.ne.s32.totalorder %s309_s16, %s1749_s8 }
  0x48   : > { %s1891_s9 = smov [#allocation4]  }
  0x49   : > { %p1752_p7 = pnand %p1750_p10, %p1738_p11  ;;  %s1754_s13 = sshll.u32 %s1891_s9, 4  ;;  %s1755_s13 = int_to_ptr.vmem [resolvable:$false] %s1754_s13 }
  0x4a   : > { %s1756_s0 = scalar_lea.vmem %s1755_s13, 256  ;;  %p1757_p12 = scmp.lt.s32.totalorder %s309_s16, %s1755_s13 }
  0x4b   : > { %p1753_p1 = pneg %p1752_p7  ;;  %p1758_p9 = scmp.lt.s32.totalorder %s1756_s0, %s1749_s8 }
  0x4d   : > { %p1759_p0 = por %p1758_p9, %p1757_p12 }
  0x4f   : > { %p1760_p3 = pnand %p1759_p0, %p1753_p1 }
  0x51   : > { %1763 = shalt.err (!%p1760_p3)
}
  0x52   : > { %s2298_s2 = smov 4   ;;  %s2299_s3 = smov 64  }
  0x53   : > { %1520 = dma.hbm_to_vmem [thread:$0]  (!%p2066_p2), %s307_s11, 128, %s309_s16, %s296_s10, %s2299_s3, %s2299_s3, %s2298_s2  }
  0x54   : > { %s318_s18 = sand.u32 1, %s1884_s26   ;;  %s1777_s20 = scalar_lea.vmem %s330_s4, 128 }
  0x55   : > { %s319_s14 = scalar_lea.sflag [#allocation8], %s318_s18  ;;  %p1778_p5 = scmp.ne.s32.totalorder %s330_s4, %s1777_s20 }
  0x56   : > { %s1892_s0 = smov [#allocation7]  }
  0x57   : > { %p1780_p10 = pnand %p1778_p5, %p1738_p11  ;;  %s1782_s12 = sshll.u32 %s1892_s0, 4  ;;  %s1783_s12 = int_to_ptr.vmem [resolvable:$false] %s1782_s12 }
  0x58   : > { %s1784_s8 = scalar_lea.vmem %s1783_s12, 256  ;;  %p1785_p1 = scmp.lt.s32.totalorder %s330_s4, %s1783_s12 }
  0x59   : > { %p1781_p7 = pneg %p1780_p10  ;;  %p1786_p12 = scmp.lt.s32.totalorder %s1784_s8, %s1777_s20 }
  0x5b   : > { %p1787_p9 = por %p1786_p12, %p1785_p1 }
  0x5d   : > { %p1788_p0 = pnand %p1787_p9, %p1781_p7 }
  0x5f   : > { %1791 = shalt.err (!%p1788_p0)
}
  0x60   : > { %1523 = dma.hbm_to_vmem [thread:$0]  (!%p2066_p2), %s2073_s19, 128, %s330_s4, %s319_s14, %s2299_s3, %s2299_s3, %s2298_s2  }
  0x61   : > { %341 = sbr.rel (%p1992_p8) target bundleno = 1525 (0x5f5), region = 44  ;;  %s2098_s16 = sand.u32 (!%p1992_p8), 1, %s1868_s22  }
  0x62   : > { %s1353_s10 = sshll.u32 (!%p1992_p8), %s2098_s16, 3  ;;  %s344_s11 = scalar_lea.sflag (!%p1992_p8), [#allocation5], %s2098_s16 }
  0x63   : > { %s347_s9 = scalar_lea.vmem (!%p1992_p8), [#allocation4], %s1353_s10 }
  0x66   : > { %1843 = dma.done.wait (%p1982_p4), %s344_s11, 128  }
  0x67   : > { %1845 = vsyncadd (%p1982_p4), %s344_s11, 4294967168  ;;  %s352_s4 = sand.u32 1, %s1973_s27   ;;  %s356_s7 = scalar_lea.vmem [#allocation7], %s1353_s10 }
  0x68   : > { %s353_s17 = scalar_lea.sflag [#allocation8], %s352_s4 }
  0x69   : > { %1847 = dma.done.wait (%p1982_p4), %s353_s17, 128  }
  0x6a   : > { %1849 = vsyncadd (%p1982_p4), %s353_s17, 4294967168  ;;  %p2300_p8 = scmp.eq.s32.totalorder %s1973_s27, 0 }
  0x6c   : > { %1851 = dma.done.wait (%p2300_p8), [#allocation8], 256   ;;  %p2301_p2 = pmov %p2300_p8 }
  0x6e   : > { %1853 = vsyncadd (%p2301_p2), [#allocation8], 4294967040  ;;  %p2302_p11 = pmov %p2301_p2 }
  0x6f   : > { %p2303_p3 = pmov %p2301_p2 }
  0x70   : > { %1855 = dma.done.wait (%p2302_p11), [#allocation11], 512  }
  0x71   : > { %1857 = vsyncadd (%p2303_p3), [#allocation11], 4294966784  ;;  %v1893_v0 = vmov 0.0   ;;  %vm1894_vm0 = vmmov 0   ;;  %v1617_v1 = vld [vmem:[#allocation10 + $0x8] sm:$0xff]   ;;  %v1618_v2 = vld [vmem:[#allocation10] sm:$0xff]  }
  0x72   : > { %1417 = vmatprep.subr.bf16.mxu0 %v1893_v0  ;;  %1421 = vmatprep.mubr.msk.bf16.mxu0 %vm1894_vm0, %v1893_v0  ;;  %v1620_v3 = vld [vmem:[#allocation9 + $0x8] sm:$0xff]   ;;  %v1619_v4 = vld [vmem:[%s356_s7] sm:$0xff]   ;;  %vm416_vm1 = vcmask 261120   ;;  %v1621_v5 = vld [vmem:[#allocation9] sm:$0xff]   ;;  %vm502_vm2 = vcmask 519168   ;;  %vm584_vm3 = vcmask 64512  }
  0x73   : > { %1425 = vmatprep.subr.bf16.mxu1 %v1893_v0  ;;  %1429 = vmatprep.mubr.msk.bf16.mxu1 %vm1894_vm0, %v1893_v0  ;;  %v1622_v6 = vld [vmem:[%s347_s9] sm:$0xff]   ;;  %s1895_s27 = smov 112   ;;  %s1896_s29 = smov 120   ;;  %vm632_vm4 = vcmask 130048   ;;  %vm1095_vm5 = vcmask 195584  }
  0x74   : > { %1418 = vmatpush3.bf16.msra.mxu0 %v1617_v1  ;;  %1426 = vmatpush3.bf16.msra.mxu1 %v1620_v3  ;;  %s1897_s19 = smov 104   ;;  %s1898_s13 = smov 96  }
  0x75   : > { %1419 = vmatprep.subr.bf16.mxu0 %v1893_v0  ;;  %1427 = vmatprep.subr.bf16.mxu1 %v1893_v0  ;;  %s1899_s2 = smov 80   ;;  %s1900_s3 = smov 72  }
  0x76   : > { %s1901_s18 = smov 88   ;;  %s1902_s14 = smov 8  }
  0x77   : > { %s1903_s20 = smov 16   ;;  %s1904_s8 = smov 24  }
  0x78   : > { %1420 = vmatpush3.bf16.msra.mxu0 %v1618_v2  ;;  %1428 = vmatpush3.bf16.msra.mxu1 %v1621_v5  ;;  %s1358_s10 = sshll.u32 %s2098_s16, 4  ;;  %s1391_s11 = sshll.u32 %s1876_s24, 8 }
  0x79   : > { %1433 = vmatprep.subr.bf16.mxu0 %v1893_v0  ;;  %1439 = vmatprep.subr.bf16.mxu1 %v1893_v0  ;;  %s401_s9 = scalar_lea.vmem [#allocation13], %s1358_s10 }
  0x7a   : > { %s1188_s4 = sshll.u32 %s401_s9, 4  ;;  %s2220_s4 = int_to_ptr.vmem [resolvable:$true] %s1188_s4 }
  0x7b   : > { %1422 = vmatmul.mubr.msk.bf16.vlgmr.msra.gmra.mxu0 %vm416_vm1, %v1619_v4  ;;  %1430 = vmatmul.mubr.msk.bf16.vlgmr.msra.gmra.mxu1 %vm416_vm1, %v1622_v6  ;;  %s1792_s24 = scalar_lea.vmem %s2220_s4, 256 }
  0x7c   : > { %1435 = vmatprep.mubr.msk.bf16.mxu0 %vm1894_vm0, %v1893_v0  ;;  %1441 = vmatprep.mubr.msk.bf16.mxu1 %vm1894_vm0, %v1893_v0  ;;  %p1793_p4 = scmp.ne.s32.totalorder %s2220_s4, %s1792_s24 }
  0x7e   : > { %p1794_p5 = pnand %p1793_p4, %p2047_p13 }
  0x80   : > { %p1795_p10 = pneg %p1794_p5 }
 0x13b   : > { %v484_v7 = vpop.f32.mrf.mxu0  ;;  %v566_v10 = vpop.f32.mrf.mxu1 }
 0x13c   : > { %v1389_v8 = vpack.c.bf16 %v484_v7, %v484_v7 }
 0x13d   : > { %v1423_v9 = vpop.f32.mrf.mxu0  ;;  %v1431_v13 = vpop.f32.mrf.mxu1 }
 0x13e   : > { %503 = vst.msk [vmem:[#allocation2] sm:$0xf] %vm502_vm2, %v1389_v8 }
 0x13f   : > { %v487_v11 = vpop.f32.mrf.mxu0  ;;  %v569_v15 = vpop.f32.mrf.mxu1 }
 0x140   : > { %v1390_v12 = vpack.c.bf16 %v487_v11, %v487_v11  ;;  %v573_v18 = vpack.c.bf16 %v569_v15, %v566_v10 }
 0x141   : > { %v1424_v14 = vpop.f32.mrf.mxu0  ;;  %v1432_v16 = vpop.f32.mrf.mxu1 }
 0x142   : > { %504 = vst.msk [vmem:[#allocation2 + $0x4] sm:$0xf] %vm502_vm2, %v1390_v12 }
 0x149   : > { %v2135_v17 = vld [vmem:[#allocation2] sm:$0xff]  }
 0x14a   : > { %827 = vrot.lane.b32.xlu1 %v2135_v17, %s1895_s27  ;;  %706 = vrot.lane.b32.xlu0 %v2135_v17, %s1896_s29  ;;  %v589_v19 = vsel %vm584_vm3, %v2135_v17, 0 }
 0x14b   : > { %1434 = vmatpush3.bf16.xpose.msra.mxu0 %v589_v19 }
 0x14c   : > { %1445 = vmatprep.subr.bf16.mxu0 %v1893_v0 }
 0x14e   : > { %825 = vrot.lane.b32.xlu1 %v573_v18, %s1895_s27  ;;  %704 = vrot.lane.b32.xlu0 %v573_v18, %s1896_s29  ;;  %s2218_s27 = scalar_lea.hbm %s2276_s6, %s1391_s11  ;;  %s1173_s29 = scalar_lea.sflag [#allocation6], %s2098_s16 }
 0x152   : > { %946 = vrot.lane.b32.xlu1 %v573_v18, %s1897_s19  ;;  %948 = vrot.lane.b32.xlu0 %v2135_v17, %s1897_s19  ;;  %s1905_s19 = smov [#allocation13]  }
 0x153   : > { %1436 = vmatmul.mubr.msk.bf16.vlgmr.msra.gmra.mxu0 %vm584_vm3, %v573_v18 }
 0x154   : > { %1447 = vmatprep.mubr.msk.bf16.mxu0 %vm1894_vm0, %v1893_v0 }
 0x1bc   : > { %v707_v20 = vpop.permute.xlu0 %706  ;;  %v828_v22 = vpop.permute.xlu1 %827 }
 0x1bd   : > { %v712_v21 = vsel %vm584_vm3, %v707_v20, 0  ;;  %v833_v24 = vsel %vm584_vm3, %v828_v22, 0 }
 0x1be   : > { %1446 = vmatpush3.bf16.xpose.msra.mxu0 %v712_v21 }
 0x1bf   : > { %1457 = vmatprep.subr.bf16.mxu0 %v1893_v0 }
 0x1c0   : > { %v705_v23 = vpop.permute.xlu0 %704  ;;  %v826_v26 = vpop.permute.xlu1 %825 }
 0x1c4   : > { %v949_v25 = vpop.permute.xlu0 %948  ;;  %v947_v28 = vpop.permute.xlu1 %946 }
 0x1c5   : > { %1448 = vmatmul.mubr.msk.bf16.vlgmr.msra.gmra.mxu0 %vm584_vm3, %v705_v23  ;;  %v954_v27 = vsel %vm584_vm3, %v949_v25, 0 }
 0x1c6   : > { %1458 = vmatpush3.bf16.xpose.msra.mxu0 %v833_v24  ;;  %1459 = vmatprep.mubr.msk.bf16.mxu0 %vm1894_vm0, %v1893_v0 }
 0x1c7   : > { %1469 = vmatprep.subr.bf16.mxu0 %v1893_v0 }
 0x1cd   : > { %1460 = vmatmul.mubr.msk.bf16.vlgmr.msra.gmra.mxu0 %vm584_vm3, %v826_v26 }
 0x1ce   : > { %1470 = vmatpush3.bf16.xpose.msra.mxu0 %v954_v27  ;;  %1471 = vmatprep.mubr.msk.bf16.mxu0 %vm1894_vm0, %v1893_v0 }
 0x1cf   : > { %1481 = vmatprep.subr.bf16.mxu0 %v1893_v0 }
 0x1d5   : > { %1472 = vmatmul.mubr.msk.bf16.vlgmr.msra.gmra.mxu0 %vm584_vm3, %v947_v28 }
 0x1d6   : > { %1485 = vmatprep.mubr.msk.bf16.mxu0 %vm1894_vm0, %v1893_v0 }
 0x213   : > { %v625_v29 = vpop.f32.mrf.mxu0 }
 0x214   : > { %v633_v30 = vsel %vm632_vm4, %v625_v29, -inf }
 0x215   : > { %634 = vmax.xlane.f32.xlu0 %v633_v30  ;;  %v1437_v31 = vpop.f32.mrf.mxu0 }
 0x217   : > { %v628_v32 = vpop.f32.mrf.mxu0 }
 0x218   : > { %v636_v33 = vsel %vm632_vm4, %v628_v32, -inf }
 0x219   : > { %637 = vmax.xlane.f32.xlu1 %v636_v33  ;;  %v1438_v34 = vpop.f32.mrf.mxu0 }
 0x285   : > { %v748_v35 = vpop.f32.mrf.mxu0 }
 0x286   : > { %v755_v36 = vsel %vm632_vm4, %v748_v35, -inf }
 0x287   : > { %756 = vmax.xlane.f32.xlu0 %v755_v36  ;;  %v1449_v37 = vpop.f32.mrf.mxu0 }
 0x289   : > { %v751_v38 = vpop.f32.mrf.mxu0 }
 0x28a   : > { %v758_v39 = vsel %vm632_vm4, %v751_v38, -inf }
 0x28b   : > { %759 = vmax.xlane.f32.xlu0 %v758_v39  ;;  %v1450_v40 = vpop.f32.mrf.mxu0 }
 0x28d   : > { %v869_v41 = vpop.f32.mrf.mxu0 }
 0x28e   : > { %v876_v42 = vsel %vm632_vm4, %v869_v41, -inf }
 0x28f   : > { %877 = vmax.xlane.f32.xlu1 %v876_v42  ;;  %v1461_v43 = vpop.f32.mrf.mxu0 }
 0x291   : > { %v872_v44 = vpop.f32.mrf.mxu0 }
 0x292   : > { %v879_v45 = vsel %vm632_vm4, %v872_v44, -inf }
 0x293   : > { %880 = vmax.xlane.f32.xlu0 %v879_v45  ;;  %v1462_v46 = vpop.f32.mrf.mxu0 }
 0x295   : > { %v990_v47 = vpop.f32.mrf.mxu0 }
 0x296   : > { %v997_v48 = vsel %vm632_vm4, %v990_v47, -inf }
 0x297   : > { %998 = vmax.xlane.f32.xlu1 %v997_v48  ;;  %v1473_v49 = vpop.f32.mrf.mxu0 }
 0x299   : > { %v993_v50 = vpop.f32.mrf.mxu0 }
 0x29a   : > { %v1000_v51 = vsel %vm632_vm4, %v993_v50, -inf }
 0x29b   : > { %1001 = vmax.xlane.f32.xlu0 %v1000_v51  ;;  %v1474_v52 = vpop.f32.mrf.mxu0 }
 0x29e   : > { %v635_v56 = vpop.xlane.xlu0 %634 }
 0x29f   : > { %v639_v57 = vsub.f32 %v625_v29, %v635_v56 }
 0x2a1   : > { %v641_v60 = vmul.f32 1.442695, %v639_v57 }
 0x2a2   : > { %v638_v53 = vpop.xlane.xlu1 %637 }
 0x2a3   : > { %v640_v54 = vsub.f32 %v628_v32, %v638_v53 }
 0x2a5   : > { %v643_v55 = vmul.f32 1.442695, %v640_v54 }
 0x2a7   : > { %1626 = vpow2.f32 %v643_v55 }
 0x2a8   : > { %656 = vrot.lane.b32.xlu1 %v2135_v17, %s1898_s13  ;;  %1628 = vpow2.f32 %v641_v60  ;;  %s1796_s13 = sshll.u32 %s1905_s19, 4  ;;  %s1797_s13 = int_to_ptr.vmem [resolvable:$false] %s1796_s13 }
 0x2a9   : > { %p1799_p7 = scmp.lt.s32.totalorder %s2220_s4, %s1797_s13 }
 0x2b4   : > { %v2170_v58 = vpop.eup %1626 }
 0x2b5   : > { %v648_v59 = vsel %vm632_vm4, %v2170_v58, 0.0  ;;  %v1629_v61 = vpop.eup %1628 }
 0x2b6   : > { %649 = vadd.xlane.f32.xlu0 %v648_v59  ;;  %v645_v62 = vsel %vm632_vm4, %v1629_v61, 0.0 }
 0x2cc   : > { %646 = vadd.xlane.f32.xlu1 %v645_v62 }
 0x310   : > { %v757_v63 = vpop.xlane.xlu0 %756 }
 0x311   : > { %v761_v1 = vsub.f32 %v748_v35, %v757_v63 }
 0x313   : > { %v763_v2 = vmul.f32 1.442695, %v761_v1 }
 0x314   : > { %v760_v3 = vpop.xlane.xlu0 %759 }
 0x315   : > { %1630 = vpow2.f32 %v763_v2  ;;  %v762_v4 = vsub.f32 %v751_v38, %v760_v3 }
 0x317   : > { %v765_v5 = vmul.f32 1.442695, %v762_v4 }
 0x318   : > { %v878_v6 = vpop.xlane.xlu1 %877 }
 0x319   : > { %1632 = vpow2.f32 %v765_v5  ;;  %v882_v7 = vsub.f32 %v869_v41, %v878_v6  ;;  %v1624_v6 = vld [vmem:[#allocation12 + $0x8] sm:$0xff]  }
 0x31a   : > { %1482 = vmatpush3.bf16.msra.mxu0 %v1624_v6 }
 0x31b   : > { %v884_v8 = vmul.f32 1.442695, %v882_v7  ;;  %1483 = vmatprep.subr.bf16.mxu0 %v1893_v0 }
 0x31c   : > { %v881_v9 = vpop.xlane.xlu0 %880 }
 0x31d   : > { %1634 = vpow2.f32 %v884_v8  ;;  %v883_v10 = vsub.f32 %v872_v44, %v881_v9 }
 0x31f   : > { %v886_v11 = vmul.f32 1.442695, %v883_v10 }
 0x320   : > { %v999_v12 = vpop.xlane.xlu1 %998 }
 0x321   : > { %1636 = vpow2.f32 %v886_v11  ;;  %v1003_v13 = vsub.f32 %v990_v47, %v999_v12  ;;  %v1625_v11 = vld [vmem:[#allocation12] sm:$0xff]  }
 0x322   : > { %v1631_v14 = vpop.eup %1630  ;;  %1484 = vmatpush3.bf16.msra.mxu0 %v1625_v11 }
 0x323   : > { %v1005_v15 = vmul.f32 1.442695, %v1003_v13  ;;  %v767_v16 = vsel %vm632_vm4, %v1631_v14, 0.0 }
 0x324   : > { %768 = vadd.xlane.f32.xlu1 %v767_v16  ;;  %v657_v18 = vpop.permute.xlu1 %656  ;;  %v1002_v19 = vpop.xlane.xlu0 %1001 }
 0x325   : > { %1638 = vpow2.f32 %v1005_v15  ;;  %v1004_v20 = vsub.f32 %v993_v50, %v1002_v19  ;;  %1440 = vmatpush3.bf16.msra.mxu1 %v657_v18  ;;  %v1359_v15 = vld [vmem:[%s2275_s5] ss:$0 sm:$0xff] }
 0x326   : > { %v1633_v21 = vpop.eup %1632  ;;  %1451 = vmatprep.subr.bf16.mxu1 %v1893_v0  ;;  %417 = vst.msk [vmem:[#allocation3] sm:$0xff] %vm416_vm1, %v1359_v15  ;;  %418 = vst.msk [vmem:[#allocation3 + $0x8] sm:$0xff] %vm416_vm1, %v1359_v15 }
 0x327   : > { %v1007_v22 = vmul.f32 1.442695, %v1004_v20  ;;  %v770_v23 = vsel %vm632_vm4, %v1633_v21, 0.0 }
 0x328   : > { %771 = vadd.xlane.f32.xlu0 %v770_v23 }
 0x329   : > { %1640 = vpow2.f32 %v1007_v22 }
 0x32a   : > { %v1635_v24 = vpop.eup %1634 }
 0x32b   : > { %v888_v25 = vsel %vm632_vm4, %v1635_v24, 0.0 }
 0x32c   : > { %889 = vadd.xlane.f32.xlu1 %v888_v25 }
 0x32e   : > { %v1637_v26 = vpop.eup %1636 }
 0x32f   : > { %v891_v27 = vsel %vm632_vm4, %v1637_v26, 0.0 }
 0x330   : > { %892 = vadd.xlane.f32.xlu0 %v891_v27 }
 0x332   : > { %v1639_v28 = vpop.eup %1638 }
 0x333   : > { %v1009_v29 = vsel %vm632_vm4, %v1639_v28, 0.0 }
 0x334   : > { %1010 = vadd.xlane.f32.xlu1 %v1009_v29 }
 0x336   : > { %v1641_v30 = vpop.eup %1640 }
 0x337   : > { %v1012_v31 = vsel %vm632_vm4, %v1641_v30, 0.0 }
 0x338   : > { %1013 = vadd.xlane.f32.xlu0 %v1012_v31 }
 0x33f   : > { %v650_v32 = vpop.xlane.xlu0 %649 }
 0x340   : > { %1642 = vrcp.f32 %v650_v32 }
 0x345   : > { %899 = vrot.lane.b32.xlu1 %v2135_v17, %s1899_s2  ;;  %s1798_s2 = scalar_lea.vmem %s1797_s13, 512 }
 0x346   : > { %p1800_p1 = scmp.lt.s32.totalorder %s1798_s2, %s1792_s24 }
 0x348   : > { %p1801_p12 = por %p1800_p1, %p1799_p7 }
 0x349   : > { %1020 = vrot.lane.b32.xlu1 %v2135_v17, %s1900_s3 }
 0x34a   : > { %p1802_p9 = pnand %p1801_p12, %p1795_p10 }
 0x34d   : > { %v1643_v34 = vpop.eup %1642 }
 0x34e   : > { %778 = vrot.lane.b32.xlu0 %v2135_v17, %s1901_s18  ;;  %v654_v37 = vmul.f32 %v1643_v34, %v2170_v58 }
 0x355   : > { %v647_v33 = vpop.xlane.xlu1 %646 }
 0x356   : > { %1644 = vrcp.f32 %v647_v33 }
 0x363   : > { %v1645_v35 = vpop.eup %1644 }
 0x364   : > { %v653_v36 = vmul.f32 %v1645_v35, %v1629_v61 }
 0x366   : > { %v655_v38 = vpack.c.bf16 %v654_v37, %v653_v36  ;;  %v1098_v37 = vld [vmem:[#allocation3] sm:$0xff] }
 0x368   : > { %1442 = vmatmul.mubr.msk.bf16.vlgmr.msra.gmra.mxu1 %vm632_vm4, %v655_v38 }
 0x369   : > { %1453 = vmatprep.mubr.msk.bf16.mxu1 %vm1894_vm0, %v1893_v0 }
 0x3ad   : > { %v769_v40 = vpop.xlane.xlu1 %768 }
 0x3b1   : > { %v772_v39 = vpop.xlane.xlu0 %771 }
 0x3b2   : > { %1646 = vrcp.f32 %v772_v39 }
 0x3b3   : > { %1648 = vrcp.f32 %v769_v40 }
 0x3b5   : > { %v890_v41 = vpop.xlane.xlu1 %889 }
 0x3b9   : > { %v893_v17 = vpop.xlane.xlu0 %892 }
 0x3ba   : > { %1650 = vrcp.f32 %v893_v17  ;;  %v1099_v17 = vld [vmem:[#allocation3 + $0x8] sm:$0xff] }
 0x3bb   : > { %1652 = vrcp.f32 %v890_v41 }
 0x3bd   : > { %v1011_v45 = vpop.xlane.xlu1 %1010 }
 0x3bf   : > { %v1647_v42 = vpop.eup %1646 }
 0x3c0   : > { %v1649_v44 = vpop.eup %1648  ;;  %v776_v46 = vmul.f32 %v1647_v42, %v1633_v21 }
 0x3c1   : > { %v1014_v43 = vpop.xlane.xlu0 %1013  ;;  %v775_v48 = vmul.f32 %v1649_v44, %v1631_v14  ;;  %v900_v51 = vpop.permute.xlu1 %899 }
 0x3c2   : > { %1654 = vrcp.f32 %v1014_v43 }
 0x3c3   : > { %1656 = vrcp.f32 %v1011_v45  ;;  %v777_v49 = vpack.c.bf16 %v776_v46, %v775_v48 }
 0x3c5   : > { %v779_v47 = vpop.permute.xlu0 %778  ;;  %v1021_v57 = vpop.permute.xlu1 %1020 }
 0x3c6   : > { %1452 = vmatpush3.bf16.msra.mxu1 %v779_v47 }
 0x3c7   : > { %1463 = vmatprep.subr.bf16.mxu1 %v1893_v0  ;;  %v1651_v50 = vpop.eup %1650 }
 0x3c8   : > { %v1653_v52 = vpop.eup %1652  ;;  %v897_v53 = vmul.f32 %v1651_v50, %v1637_v26 }
 0x3c9   : > { %1454 = vmatmul.mubr.msk.bf16.vlgmr.msra.gmra.mxu1 %vm632_vm4, %v777_v49  ;;  %v896_v54 = vmul.f32 %v1653_v52, %v1635_v24 }
 0x3ca   : > { %1464 = vmatpush3.bf16.msra.mxu1 %v900_v51  ;;  %1465 = vmatprep.mubr.msk.bf16.mxu1 %vm1894_vm0, %v1893_v0 }
 0x3cb   : > { %1475 = vmatprep.subr.bf16.mxu1 %v1893_v0  ;;  %v898_v55 = vpack.c.bf16 %v897_v53, %v896_v54 }
 0x3cf   : > { %v1655_v56 = vpop.eup %1654 }
 0x3d0   : > { %v1657_v58 = vpop.eup %1656  ;;  %v1018_v59 = vmul.f32 %v1655_v56, %v1641_v30 }
 0x3d1   : > { %1466 = vmatmul.mubr.msk.bf16.vlgmr.msra.gmra.mxu1 %vm632_vm4, %v898_v55  ;;  %v1017_v60 = vmul.f32 %v1657_v58, %v1639_v28 }
 0x3d2   : > { %1476 = vmatpush3.bf16.msra.mxu1 %v1021_v57  ;;  %1477 = vmatprep.mubr.msk.bf16.mxu1 %vm1894_vm0, %v1893_v0 }
 0x3d3   : > { %v1019_v61 = vpack.c.bf16 %v1018_v59, %v1017_v60 }
 0x3d9   : > { %1478 = vmatmul.mubr.msk.bf16.vlgmr.msra.gmra.mxu1 %vm632_vm4, %v1019_v61 }
 0x428   : > { %v696_v62 = vpop.f32.mrf.mxu1 }
 0x42a   : > { %v1443_v63 = vpop.f32.mrf.mxu1 }
 0x42c   : > { %v699_v1 = vpop.f32.mrf.mxu1 }
 0x42e   : > { %v1444_v2 = vpop.f32.mrf.mxu1 }
 0x489   : > { %v818_v3 = vpop.f32.mrf.mxu1 }
 0x48b   : > { %v1455_v4 = vpop.f32.mrf.mxu1 }
 0x48d   : > { %v821_v5 = vpop.f32.mrf.mxu1 }
 0x48e   : > { %v1602_v7 = vpack.i.bf16 %v821_v5, %v818_v3 }
 0x48f   : > { %v1456_v8 = vpop.f32.mrf.mxu1 }
 0x490   : > { %1603 = vrot.lane.b32.xlu0 %v1602_v7, %s1902_s14 }
 0x491   : > { %v939_v9 = vpop.f32.mrf.mxu1 }
 0x493   : > { %v1467_v10 = vpop.f32.mrf.mxu1 }
 0x495   : > { %v942_v12 = vpop.f32.mrf.mxu1 }
 0x496   : > { %v1607_v13 = vpack.i.bf16 %v942_v12, %v939_v9 }
 0x497   : > { %v1468_v14 = vpop.f32.mrf.mxu1 }
 0x498   : > { %1608 = vrot.lane.b32.xlu1 %v1607_v13, %s1903_s20 }
 0x499   : > { %v1060_v16 = vpop.f32.mrf.mxu1 }
 0x49b   : > { %v1479_v18 = vpop.f32.mrf.mxu1 }
 0x49d   : > { %v1063_v0 = vpop.f32.mrf.mxu1 }
 0x49e   : > { %v1612_v19 = vpack.i.bf16 %v1063_v0, %v1060_v16 }
 0x49f   : > { %v1480_v20 = vpop.f32.mrf.mxu1 }
 0x4a0   : > { %1613 = vrot.lane.b32.xlu0 %v1612_v19, %s1904_s8 }
 0x502   : > { %v1604_v21 = vpop.permute.xlu0 %1603 }
 0x503   : > { %v1606_v23 = vunpack.i.h.bf16 %v1604_v21  ;;  %v1605_v24 = vunpack.i.l.bf16 %v1604_v21 }
 0x505   : > { %v1092_v28 = vsel %vm584_vm3, %v699_v1, %v1606_v23  ;;  %v1091_v29 = vsel %vm584_vm3, %v696_v62, %v1605_v24 }
 0x50a   : > { %v1609_v22 = vpop.permute.xlu1 %1608 }
 0x50b   : > { %v1611_v25 = vunpack.i.h.bf16 %v1609_v22  ;;  %v1610_v26 = vunpack.i.l.bf16 %v1609_v22 }
 0x50d   : > { %v1094_v32 = vsel %vm632_vm4, %v1092_v28, %v1611_v25  ;;  %v1093_v33 = vsel %vm632_vm4, %v1091_v29, %v1610_v26 }
 0x512   : > { %v1614_v27 = vpop.permute.xlu0 %1613 }
 0x513   : > { %v1616_v30 = vunpack.i.h.bf16 %v1614_v27  ;;  %v1615_v31 = vunpack.i.l.bf16 %v1614_v27 }
 0x515   : > { %v1097_v34 = vsel %vm1095_vm5, %v1094_v32, %v1616_v30  ;;  %v1096_v35 = vsel %vm1095_vm5, %v1093_v33, %v1615_v31 }
 0x516   : > { %v1100_v36 = vpack.c.bf16 %v1097_v34, %v1096_v35 }
 0x518   : > { %1486 = vmatmul.mubr.msk.bf16.vlgmr.msra.gmra.mxu0 %vm416_vm1, %v1100_v36 }
 0x5d8   : > { %v1154_v38 = vpop.f32.mrf.mxu0 }
 0x5d9   : > { %v1161_v39 = vadd.f32 %v1154_v38, %v1098_v37 }
 0x5da   : > { %v1487_v40 = vpop.f32.mrf.mxu0 }
 0x5db   : > { %1163 = vst.msk [vmem:[#allocation3] sm:$0xff] %vm416_vm1, %v1161_v39 }
 0x5dc   : > { %v1157_v41 = vpop.f32.mrf.mxu0 }
 0x5dd   : > { %v1162_v42 = vadd.f32 %v1157_v41, %v1099_v17 }
 0x5de   : > { %v1488_v43 = vpop.f32.mrf.mxu0 }
 0x5df   : > { %1164 = vst.msk [vmem:[#allocation3 + $0x8] sm:$0xff] %vm416_vm1, %v1162_v42 }
 0x5e2   : > { %v1168_v44 = vld [vmem:[#allocation3] sm:$0xff] }
 0x5e3   : > { %1170 = vst.msk [vmem:[%s401_s9] sm:$0xff] %vm416_vm1, %v1168_v44 }
 0x5e6   : > { %v1169_v45 = vld [vmem:[#allocation3 + $0x8] sm:$0xff] }
 0x5e7   : > { %1171 = vst.msk [vmem:[%s401_s9 + $0x8] sm:$0xff] %vm416_vm1, %v1169_v45 }
 0x5e8   : > { %1805 = shalt.err (!%p1802_p9)
}
 0x5e9   : > { %s1806_s3 = scalar_lea.hbm %s2218_s27, 256  ;;  %s1810_s0 = scalar_lea.hbm %s2276_s6, 512 }
 0x5ea   : > { %p1807_p0 = scmp.ne.s32.totalorder %s2218_s27, %s1806_s3  ;;  %p1811_p11 = scmp.lt.s32.totalorder %s2218_s27, %s2276_s6 }
 0x5eb   : > { %p1812_p3 = scmp.lt.s32.totalorder %s1810_s0, %s1806_s3 }
 0x5ec   : > { %p1808_p8 = pnand %p1807_p0, %p2047_p13 }
 0x5ed   : > { %p1813_p4 = por %p1812_p3, %p1811_p11 }
 0x5ee   : > { %p1809_p2 = pneg %p1808_p8 }
 0x5f0   : > { %p1814_p5 = pnand %p1813_p4, %p1809_p2 }
 0x5f2   : > { %1817 = shalt.err (!%p1814_p5)
}
 0x5f3   : > { %s1906_s10 = smov 128  }
 0x5f4   : > { %1505 = dma.vmem_to_hbm [thread:$0]  (%p2047_p13), %s2220_s4, 256, %s2218_s27, %s1173_s29, %s1906_s10, %s1906_s10, %s1902_s14  }
 0x5f5 PF: > { %s1203_s11 = sand.u32 1, %s1864_s21   ;;  %p2304_p10 = scmp.ge.s32.totalorder %s1884_s26, 2 }
 0x5f6   : > { %s1204_s9 = scalar_lea.sflag [#allocation6], %s1203_s11 }
 0x5f7   : > { %p1525_p7 = pnand %p2304_p10, %p1987_p6 }
 0x5f9   : > { %p1526_p1 = pneg %p1525_p7 }
 0x5fb   : > { %1859 = dma.done.wait (%p1526_p1), %s1204_s9, 256  }
 0x5fc   : > { %1861 = vsyncadd (%p1526_p1), %s1204_s9, 4294967040  ;;  %s26_s26 = sadd.s32 1, %s1884_s26   ;;  %s2305_s15 = sld [smem:[#allocation19_spill]] }
 0x5fd   : > { %p23_p12 = scmp.ge.s32.totalorder %s26_s26, 4   ;;  %s2306_s21 = smov %s1868_s22 }
 0x5fe   : > { %s2307_s22 = smov %s1872_s23  ;;  %s2308_s23 = smov %s2059_s28 }
 0x5ff   : > { %s2309_s24 = smov %s1880_s25  ;;  %25 = sbr.rel (!%p23_p12) target bundleno = 14 (0xe), region = 131 }
 0x602   : > { %s2310_s25 = smov %s2305_s15 }
 0x604   :  { %1209 = vsyncpa [#allocation5], 1 }
 0x605   :  { %1211 = vsyncpa [#allocation5 + $0x1], 1 }
 0x606   :  { %1212 = vsyncpa [#allocation8], 1 }
 0x607   :  { %1214 = vsyncpa [#allocation8 + $0x1], 1 }
 0x608   :  { %1215 = vsyncpa [#allocation11], 1 }
 0x609   :  { %1216 = vsyncpa [#allocation6], 1 }
 0x60a   :  { %1218 = vsyncpa [#allocation6 + $0x1], 1 }

</bundles_post_ra>
